<compile_context>
chip_gen: v6e
topology: v6e:2x2x1
jax: 0.10.0
libtpu: 0.0.40
codegen_flags: <defaults>
</compile_context>

<pallas_src>
import jax
import jax.numpy as jnp
import numpy as np
from jax.experimental import pallas as pl
from jax.experimental.pallas import tpu as pltpu

_LANES = 128            # rows packed per lane-dense group
_TG_MAX = 1024          # packed rows per tile (= 131072 original rows, ~5 MiB/input buffer)
_VMEM_LIMIT = 40 << 20  # explicit scoped-VMEM budget (~23 MiB actually used at tg=1024)


def _round_up(n, m):
    return ((n + m - 1) // m) * m


def _block_diag_weight(w, lanes=_LANES):
    """(D,1) Linear weight -> (lanes*D, lanes) block-diagonal matrix W such that
    a packed row [r0_f0..f9, r1_f0..f9, ...] @ W gives the 128 per-row dot products."""
    w = jnp.ravel(w).astype(jnp.float32)        # (D,)
    d = w.shape[0]
    eye = jnp.eye(lanes, dtype=jnp.float32)     # (lanes, lanes)
    wbd = eye[:, None, :] * w[None, :, None]    # (lanes, D, lanes)
    return wbd.reshape(lanes * d, lanes)        # W[D*c + k, c] = w[k]


# ---------------------------------------------------------------------------
# Kernels
# ---------------------------------------------------------------------------
def _mxu_blockdiag_kernel(x1_ref, x2_ref, w1_ref, w2_ref, b_ref, o_ref):
    # x1_ref/x2_ref: (tg, 128*D) f32   w*_ref: (128*D, 128) f32 (resident)
    # b_ref: (1,) f32 in SMEM (b1+b2)  o_ref: (tg, 128)
    acc = jnp.dot(x1_ref[...], w1_ref[...], preferred_element_type=jnp.float32)
    acc = acc + jnp.dot(x2_ref[...], w2_ref[...], preferred_element_type=jnp.float32)
    o_ref[...] = (acc + b_ref[0]).astype(o_ref.dtype)


def _vpu_rowwise_kernel(x1_ref, x2_ref, w_ref, b_ref, o_ref):
    # Fallback for <128 remainder rows / tiny batches; single fused lane-reduce.
    w1 = w_ref[0:1, :]                          # (1, D)
    w2 = w_ref[1:2, :]
    y = jnp.sum(x1_ref[...] * w1 + x2_ref[...] * w2, axis=-1, keepdims=True) + b_ref[0]
    o_ref[...] = y.astype(o_ref.dtype)


# ---------------------------------------------------------------------------
# pallas_call wrappers
# ---------------------------------------------------------------------------
def _run_mxu_path(x1p, x2p, w1_bd, w2_bd, b, tg):
    G, K = x1p.shape
    grid = (pl.cdiv(G, tg),)
    return pl.pallas_call(
        _mxu_blockdiag_kernel,
        out_shape=jax.ShapeDtypeStruct((G, _LANES), x1p.dtype),
        grid=grid,
        in_specs=[
            pl.BlockSpec((tg, K), lambda i: (i, 0)),            # x1 packed row tile
            pl.BlockSpec((tg, K), lambda i: (i, 0)),            # x2 packed row tile
            pl.BlockSpec((K, _LANES), lambda i: (0, 0)),        # block-diag w1 (resident)
            pl.BlockSpec((K, _LANES), lambda i: (0, 0)),        # block-diag w2 (resident)
            pl.BlockSpec(memory_space=pltpu.MemorySpace.SMEM),  # folded bias scalar
        ],
        out_specs=pl.BlockSpec((tg, _LANES), lambda i: (i, 0)), # lane-dense output
        compiler_params=pltpu.CompilerParams(
            dimension_semantics=("parallel",),                  # shard tiles over v7x TCs
            vmem_limit_bytes=_VMEM_LIMIT,
        ),
    )(x1p, x2p, w1_bd, w2_bd, b)


def _run_vpu_path(x1r, x2r, w_rows, b):
    Br, _ = x1r.shape
    return pl.pallas_call(
        _vpu_rowwise_kernel,
        out_shape=jax.ShapeDtypeStruct((Br, 1), x1r.dtype),
        in_specs=[
            pl.BlockSpec(memory_space=pltpu.MemorySpace.VMEM),
            pl.BlockSpec(memory_space=pltpu.MemorySpace.VMEM),
            pl.BlockSpec(memory_space=pltpu.MemorySpace.VMEM),
            pl.BlockSpec(memory_space=pltpu.MemorySpace.SMEM),
        ],
        out_specs=pl.BlockSpec(memory_space=pltpu.MemorySpace.VMEM),
    )(x1r, x2r, w_rows, b)


def multiple_input_net(x1, x2, w1, b1, w2, b2, *, tg=None):
    """x1, x2: (B, D) f32.  w1, w2: (D, 1).  b1, b2: (1, 1) or (1,).  Returns (B, 1)."""
    B, D = x1.shape
    assert x2.shape == (B, D)

    b = (jnp.ravel(b1) + jnp.ravel(b2)).astype(jnp.float32)   # (1,) folded bias

    B_main = (B // _LANES) * _LANES
    parts = []

    if B_main > 0:
        G = B_main // _LANES
        x1p = (x1 if B_main == B else x1[:B_main]).reshape(G, _LANES * D)
        x2p = (x2 if B_main == B else x2[:B_main]).reshape(G, _LANES * D)
        w1_bd = _block_diag_weight(w1)
        w2_bd = _block_diag_weight(w2)

        tg_eff = tg
        if tg_eff is None:
            tg_eff = min(_TG_MAX, G)
            if G >= 16:
                # keep >=2 grid tiles so both v7x TensorCores get work
                tg_eff = min(tg_eff, _round_up(pl.cdiv(G, 2), 8))
        out_packed = _run_mxu_path(x1p, x2p, w1_bd, w2_bd, b, tg_eff)   # (G, 128)
        parts.append(out_packed.reshape(B_main, 1))

    if B_main < B:  # remainder rows (or whole batch when B < 128)
        w_rows = jnp.concatenate(
            [jnp.ravel(w1).reshape(1, D), jnp.ravel(w2).reshape(1, D)], axis=0
        ).astype(jnp.float32)
        parts.append(_run_vpu_path(x1[B_main:], x2[B_main:], w_rows, b))

    return parts[0] if len(parts) == 1 else jnp.concatenate(parts, axis=0)


def init_params(key, in_features=10, out_features=1):
    # Deterministic init mimicking torch.nn.Linear's U(-1/sqrt(fan_in), 1/sqrt(fan_in)).
    k1, k2, k3, k4 = jax.random.split(key, 4)
    bound = 1.0 / jnp.sqrt(float(in_features))
    w1 = jax.random.uniform(k1, (in_features, out_features), jnp.float32, -bound, bound)
    b1 = jax.random.uniform(k2, (1, out_features), jnp.float32, -bound, bound)
    w2 = jax.random.uniform(k3, (in_features, out_features), jnp.float32, -bound, bound)
    b2 = jax.random.uniform(k4, (1, out_features), jnp.float32, -bound, bound)
    return w1, b1, w2, b2


if __name__ == "__main__":
    key = jax.random.PRNGKey(0)
    kp, kx1, kx2, ky1, ky2, kz1, kz2 = jax.random.split(key, 7)

    D = 10
    w1, b1, w2, b2 = init_params(kp, in_features=D, out_features=1)

    # Precise host-side reference (float64), independent of TPU matmul precision.
    w1_np, b1_np = np.asarray(w1, np.float64), np.asarray(b1, np.float64)
    w2_np, b2_np = np.asarray(w2, np.float64), np.asarray(b2, np.float64)

    def ref(a1, a2):
        return (np.asarray(a1, np.float64) @ w1_np + b1_np
                + np.asarray(a2, np.float64) @ w2_np + b2_np)

    # 1) Tiny batch (matches the torch test usage, batch=8) -> VPU path only.
    B = 8
    x1 = jax.random.normal(kx1, (B, D), jnp.float32)
    x2 = jax.random.normal(kx2, (B, D), jnp.float32)
    out = jax.block_until_ready(multiple_input_net(x1, x2, w1, b1, w2, b2))
    assert out.shape == (B, 1)
    assert np.allclose(np.asarray(out), ref(x1, x2), atol=1e-5, rtol=1e-5)

    # 2) Multiple-of-128 batch -> lane-dense MXU path, 2 grid tiles (G=16).
    B2 = 2048
    y1 = jax.random.normal(ky1, (B2, D), jnp.float32)
    y2 = jax.random.normal(ky2, (B2, D), jnp.float32)
    out2 = jax.block_until_ready(multiple_input_net(y1, y2, w1, b1, w2, b2))
    assert out2.shape == (B2, 1)
    assert np.allclose(np.asarray(out2), ref(y1, y2), atol=1e-3, rtol=1e-3)

    # 3) Non-multiple batch -> MXU prefix (1024 rows) + VPU remainder (40 rows).
    B3 = 1064
    z1 = jax.random.normal(kz1, (B3, D), jnp.float32)
    z2 = jax.random.normal(kz2, (B3, D), jnp.float32)
    out3 = jax.block_until_ready(multiple_input_net(z1, z2, w1, b1, w2, b2))
    assert out3.shape == (B3, 1)
    assert np.allclose(np.asarray(out3), ref(z1, z2), atol=1e-3, rtol=1e-3)

    print("KERNEL_OK")
</pallas_src>

<mosaic_0001>
module attributes {stable_mosaic.version = 11 : i64} {
  func.func @_vpu_rowwise_kernel(%arg0: memref<8x10xf32, #tpu.memory_space<vmem>>, %arg1: memref<8x10xf32, #tpu.memory_space<vmem>>, %arg2: memref<2x10xf32, #tpu.memory_space<vmem>>, %arg3: memref<1xf32, #tpu.memory_space<smem>>, %arg4: memref<8x1xf32, #tpu.memory_space<vmem>>) attributes {dimension_semantics = [], scalar_prefetch = 0 : i64, scratch_operands = 0 : i64, tpu.core_type = #tpu.core_type<tc>} {
    %c0 = arith.constant 0 : index
    %c0_0 = arith.constant 0 : index
    %0 = vector.load %arg2[%c0, %c0_0] : memref<2x10xf32, #tpu.memory_space<vmem>>, vector<1x10xf32>
    %c1 = arith.constant 1 : index
    %c0_1 = arith.constant 0 : index
    %1 = vector.load %arg2[%c1, %c0_1] : memref<2x10xf32, #tpu.memory_space<vmem>>, vector<1x10xf32>
    %c0_2 = arith.constant 0 : index
    %c0_3 = arith.constant 0 : index
    %2 = vector.load %arg0[%c0_2, %c0_3] : memref<8x10xf32, #tpu.memory_space<vmem>>, vector<8x10xf32>
    %3 = vector.broadcast %0 : vector<1x10xf32> to vector<8x10xf32>
    %4 = arith.mulf %2, %3 : vector<8x10xf32>
    %c0_4 = arith.constant 0 : index
    %c0_5 = arith.constant 0 : index
    %5 = vector.load %arg1[%c0_4, %c0_5] : memref<8x10xf32, #tpu.memory_space<vmem>>, vector<8x10xf32>
    %6 = vector.broadcast %1 : vector<1x10xf32> to vector<8x10xf32>
    %7 = arith.mulf %5, %6 : vector<8x10xf32>
    %8 = arith.addf %4, %7 : vector<8x10xf32>
    %cst = arith.constant dense<0.000000e+00> : vector<8xf32>
    %9 = vector.multi_reduction <add>, %8, %cst [1] : vector<8x10xf32> to vector<8xf32>
    %10 = vector.shape_cast %9 : vector<8xf32> to vector<8x1xf32>
    %c0_6 = arith.constant 0 : index
    %11 = memref.load %arg3[%c0_6] : memref<1xf32, #tpu.memory_space<smem>>
    %12 = vector.broadcast %11 : f32 to vector<8x1xf32>
    %13 = arith.addf %10, %12 : vector<8x1xf32>
    %c0_7 = arith.constant 0 : index
    %c0_8 = arith.constant 0 : index
    %14 = vector.load %arg4[%c0_7, %c0_8] : memref<8x1xf32, #tpu.memory_space<vmem>>, vector<8x1xf32>
    tpu.vector_store %arg4[%c0_7, %c0_8], %13 {strides = array<i32>} : memref<8x1xf32, #tpu.memory_space<vmem>>, vector<8x1xf32>,
    return
  }
}

</mosaic_0001>

<bundles_post_ra>
// kernel: tpu_custom_call.1
= control target key start
LH: loop header
LB: loop body
LE: loop exit
PB: predicated region body
PF: predicated region fallthrough
CT: control target
= control target key end

     0   :  { %10 = vsyncpa [#allocation4], 0  ;;  %s165_s0 = inlined_call_operand.hbm [shape: f32[8,10], index: 0, kind: input, shape index: {}]   ;;  %s166_s1 = inlined_call_operand.hbm [shape: f32[8,10], index: 1, kind: input, shape index: {}]   ;;  %s167_s2 = inlined_call_operand.vmem [shape: f32[2,10], index: 2, kind: input, shape index: {}]   ;;  %s168_s3 = inlined_call_operand.<no memory space> [shape: f32[1], index: 3, kind: input, shape index: {}]   ;;  %s169_s4 = inlined_call_operand.vmem [shape: f32[8,1], index: 4, kind: output, shape index: {}]  }
   0x1   :  { %11 = vsyncpa [#allocation6], 0  ;;  %s120_s15 = smov [#allocation3]   ;;  %s121_s17 = smov [#allocation5]  }
   0x2   :  { %s18_s16 = sshll.u32 %s120_s15, 4  ;;  %s28_s18 = sshll.u32 %s121_s17, 4  ;;  %s19_s16 = int_to_ptr.vmem [resolvable:$true] %s18_s16  ;;  %s29_s18 = int_to_ptr.vmem [resolvable:$true] %s28_s18 }
   0x3   :  { %s84_s19 = scalar_lea.vmem %s19_s16, 128  ;;  %p89_p1 = scmp.lt.s32.totalorder %s19_s16, %s19_s16 }
   0x4   :  { %p85_p0 = scmp.ne.s32.totalorder %s19_s16, %s84_s19  ;;  %p90_p2 = scmp.lt.s32.totalorder %s84_s19, %s84_s19 }
   0x6   :  { %p91_p3 = por %p90_p2, %p89_p1 }
   0x8   :  { %p92_p4 = pnand %p91_p3, %p85_p0 }
   0xa   :  { %95 = shalt.err (!%p92_p4)
}
   0xb   :  { %21 = dma.hbm_to_vmem [thread:$0]  %s165_s0, 128, %s19_s16, [#allocation4]  }
   0xc   :  { %s104_s22 = scalar_lea.vmem %s29_s18, 128  ;;  %p109_p6 = scmp.lt.s32.totalorder %s29_s18, %s29_s18 }
   0xd   :  { %p105_p5 = scmp.ne.s32.totalorder %s29_s18, %s104_s22  ;;  %p110_p7 = scmp.lt.s32.totalorder %s104_s22, %s104_s22 }
   0xf   :  { %p111_p8 = por %p110_p7, %p109_p6 }
  0x11   :  { %p112_p9 = pnand %p111_p8, %p105_p5 }
  0x13   :  { %115 = shalt.err (!%p112_p9)
}
  0x14   :  { %31 = dma.hbm_to_vmem [thread:$0]  %s166_s1, 128, %s29_s18, [#allocation6]  }
  0x15   :  { %116 = dma.done.wait [#allocation4], 128  }
  0x16   :  { %117 = vsyncadd [#allocation4], 4294967168 }
  0x17   :  { %118 = dma.done.wait [#allocation6], 128  }
  0x18   :  { %119 = vsyncadd [#allocation6], 4294967168  ;;  %v72_v0 = vld [vmem:[%s167_s2] ss:$0 sm:$0xff]  ;;  %v73_v1 = vld [vmem:[%s167_s2 + $0x1] ss:$0 sm:$0xff]  ;;  %v62_v8 = vstv %s168_s3 }
  0x19   :  { %v44_v2 = vld [vmem:[#allocation3] sm:$0xff]  ;;  %v50_v4 = vld [vmem:[#allocation5] sm:$0xff]  ;;  %vm57_vm0 = vcmask 80896   ;;  %vm64_vm1 = vcmask 7168  }
  0x1a   :  { %v49_v3 = vmul.f32 %v72_v0, %v44_v2  ;;  %v55_v5 = vmul.f32 %v73_v1, %v50_v4 }
  0x1c   :  { %v56_v6 = vadd.f32 %v55_v5, %v49_v3 }
  0x1e   :  { %v58_v7 = vsel %vm57_vm0, %v56_v6, 0.0 }
  0x1f   :  { %59 = vadd.xlane.f32.xlu0 %v58_v7 }
  0xa8   :  { %v60_v9 = vpop.xlane.xlu0 %59 }
  0xa9   :  { %v63_v10 = vadd.f32 %v62_v8, %v60_v9 }
  0xab   :  { %65 = vst.msk [vmem:[%s169_s4] sm:$0xff] %vm64_vm1, %v63_v10 }
  0xac   :  { %70 = vsyncpa [#allocation4], 1 }
  0xad   :  { %71 = vsyncpa [#allocation6], 1 }

</bundles_post_ra>
